<compile_context>
chip_gen: v5e
topology: v5e:2x2
jax: 0.10.0
libtpu: 0.0.40
codegen_flags: <defaults>
</compile_context>

<pallas_src>
import jax
import jax.numpy as jnp
from jax import lax
from jax.experimental import pallas as pl
from jax.experimental.pallas import tpu as pltpu


def _dense_decoder_kernel(x2win_ref, x32_ref, w32_ref, wc_ref, bc_ref, out_ref):
    # MaxPool2d(3, stride=16, padding=1) + torch.max over channels: both are
    # maxes, fused into one reduction over the (9 taps * C2) sublane axis (f32).
    pooled = jnp.max(x2win_ref[...], axis=1)                              # (bt, S2) f32

    # 1x1 conv on x32: contract the channel (sublane) axis.  Its bias b32 is
    # folded into the fused linear bias bc.
    conv = jnp.sum(x32_ref[...] * w32_ref[...], axis=1)                   # (bt, S2) f32

    # Single fused Linear (W1, b1, W2, b2, b32 folded offline):
    # bf16 operands on the MXU, f32 accumulation, lane-dense output.
    x = (pooled + conv).astype(jnp.bfloat16)                              # (bt, S2)
    y = jnp.dot(x, wc_ref[...], preferred_element_type=jnp.float32) + bc_ref[...]
    out_ref[...] = y.astype(out_ref.dtype)                                # (bt, NCpad)


def init_params(key, in_planes, size, num_classes):
    """Deterministic synthetic parameters matching DenseDecoder.__init__ shapes."""
    S2 = size * size
    ks = jax.random.split(key, 6)
    return {
        "w32": 0.3 * jax.random.normal(ks[0], (1, in_planes, 1, 1), jnp.float32),  # Conv2d(in_planes, 1, 1)
        "b32": 0.1 * jax.random.normal(ks[1], (1,), jnp.float32),
        "w1": 0.1 * jax.random.normal(ks[2], (S2, S2), jnp.float32),                # Linear(S2, S2)
        "b1": 0.1 * jax.random.normal(ks[3], (S2,), jnp.float32),
        "w2": 0.1 * jax.random.normal(ks[4], (num_classes, S2), jnp.float32),       # Linear(S2, num_classes)
        "b2": 0.1 * jax.random.normal(ks[5], (num_classes,), jnp.float32),
    }


def _pool_taps(x, axis, size):
    """The 3 stride-16 max-pool taps (offsets -1, 0, +1) along `axis`, taken
    from the UNPADDED tensor.  The out-of-range '-1' tap of the first window is
    replaced by that window's '0' tap, which leaves the per-window max unchanged
    (same result as MaxPool2d's -inf padding) without materializing a padded
    copy of x2."""
    hi = 16 * (size - 1)
    t0 = lax.slice_in_dim(x, 0, hi + 1, stride=16, axis=axis)   # offsets 16*i
    tp = lax.slice_in_dim(x, 1, hi + 2, stride=16, axis=axis)   # offsets 16*i + 1
    tm = jnp.concatenate(
        [lax.slice_in_dim(x, 0, 1, axis=axis),                  # clamp for window 0
         lax.slice_in_dim(x, 15, hi, stride=16, axis=axis)],    # offsets 16*i - 1, i >= 1
        axis=axis)
    return tm, t0, tp


def dense_decoder_forward(params, x2, x4, x8, x16, x32, *, size, batch_block=256):
    """Pallas implementation of DenseDecoder.forward (x4/x8/x16 are unused, as in PyTorch)."""
    del x4, x8, x16
    B, C2, H, W = x2.shape
    _, C32, Hs, Ws = x32.shape
    assert Hs == size and Ws == size
    assert H == 16 * size and W == 16 * size, "MaxPool2d(3, stride=16, pad=1) maps 16*size -> size"
    S2 = size * size
    num_classes = params["b2"].shape[0]
    nc_pad = ((num_classes + 127) // 128) * 128           # lane-dense output width

    # ---- layout glue: 9 pool taps from the UNPADDED x2 (touches only 3/16 of its rows) ----
    rt = jnp.stack(_pool_taps(x2, axis=2, size=size), axis=2)    # (B, C2, 3, size, W)
    win = jnp.stack(_pool_taps(rt, axis=4, size=size), axis=3)   # (B, C2, 3, 3, size, size)
    x2win = win.reshape(B, 9 * C2, S2)                           # taps+channels on sublanes, spatial on lanes

    x32f = x32.reshape(B, C32, S2)
    w32 = params["w32"].reshape(1, C32, 1)

    # ---- offline algebraic fusion of the two bias-only Linears (+ conv bias b32) ----
    hp = lax.Precision.HIGHEST
    w2t = params["w2"].T                                                        # (S2, NC)
    wc = jnp.dot(params["w1"].T, w2t, precision=hp)                             # (S2, NC)
    bc = (jnp.dot(params["b1"], w2t, precision=hp) + params["b2"]
          + params["b32"].reshape(()) * jnp.sum(wc, axis=0))                    # (NC,)
    wc_p = jnp.zeros((S2, nc_pad), jnp.float32).at[:, :num_classes].set(wc)
    wc_p = wc_p.astype(jnp.bfloat16)                                            # bf16 MXU weight
    bc_p = jnp.zeros((1, nc_pad), jnp.float32).at[0, :num_classes].set(bc)

    # Batch tiling: trivial single step at small B; "parallel" shards over v7x's 2 TCs at large B.
    bt = min(B, batch_block)
    grid = (pl.cdiv(B, bt),)

    out_p = pl.pallas_call(
        _dense_decoder_kernel,
        out_shape=jax.ShapeDtypeStruct((B, nc_pad), jnp.float32),
        grid=grid,
        in_specs=[
            pl.BlockSpec((bt, 9 * C2, S2), lambda i: (i, 0, 0)),   # pool taps
            pl.BlockSpec((bt, C32, S2), lambda i: (i, 0, 0)),      # x32 channels
            pl.BlockSpec((1, C32, 1), lambda i: (0, 0, 0)),        # 1x1 conv weight
            pl.BlockSpec((S2, nc_pad), lambda i: (0, 0)),          # fused linear weight (bf16)
            pl.BlockSpec((1, nc_pad), lambda i: (0, 0)),           # fused bias (f32)
        ],
        out_specs=pl.BlockSpec((bt, nc_pad), lambda i: (i, 0)),
        compiler_params=pltpu.CompilerParams(
            dimension_semantics=("parallel",)),
    )(x2win, x32f, w32, wc_p, bc_p)

    return out_p[:, :num_classes]


def dense_decoder_reference(params, x2, x32, *, size):
    """Pure-JAX reference mirroring the PyTorch forward (unfused, f32 HIGHEST)."""
    pooled = lax.reduce_window(
        x2, -jnp.inf, lax.max,
        window_dimensions=(1, 1, 3, 3),
        window_strides=(1, 1, 16, 16),
        padding=((0, 0), (0, 0), (1, 1), (1, 1)))
    pooled = jnp.max(pooled, axis=1, keepdims=True)                       # (B,1,size,size)
    conv = jnp.einsum("bchw,oc->bohw", x32, params["w32"].reshape(1, -1),
                      precision=lax.Precision.HIGHEST)
    conv = conv + params["b32"].reshape(1, 1, 1, 1)
    x = (pooled + conv).reshape(x2.shape[0], -1)
    h = jnp.dot(x, params["w1"].T, precision=lax.Precision.HIGHEST) + params["b1"]
    y = jnp.dot(h, params["w2"].T, precision=lax.Precision.HIGHEST) + params["b2"]
    return y


if __name__ == "__main__":
    B, in_planes, size, num_classes = 2, 4, 8, 10
    C2 = 4                      # channel count of x2 (free: it is max-reduced away)
    H = 16 * size               # MaxPool2d(3, stride=16, pad=1) maps 16*size -> size

    key = jax.random.PRNGKey(0)
    k_in, k_par = jax.random.split(key)
    kx = jax.random.split(k_in, 5)
    x2 = jax.random.normal(kx[0], (B, C2, H, H), jnp.float32)
    x4 = jax.random.normal(kx[1], (B, C2, H // 2, H // 2), jnp.float32)    # unused by forward
    x8 = jax.random.normal(kx[2], (B, C2, H // 4, H // 4), jnp.float32)    # unused by forward
    x16 = jax.random.normal(kx[3], (B, C2, H // 8, H // 8), jnp.float32)   # unused by forward
    x32 = jax.random.normal(kx[4], (B, in_planes, size, size), jnp.float32)

    params = init_params(k_par, in_planes, size, num_classes)

    out = dense_decoder_forward(params, x2, x4, x8, x16, x32, size=size)
    out = jax.block_until_ready(out)

    ref = dense_decoder_reference(params, x2, x32, size=size)
    assert out.shape == (B, num_classes)
    assert jnp.allclose(out, ref, rtol=2e-2, atol=2e-2)
    print("KERNEL_OK")
</pallas_src>

<mosaic_0001>
module attributes {stable_mosaic.version = 11 : i64} {
  func.func @_dense_decoder_kernel(%arg0: i32, %arg1: memref<2x36x64xf32, #tpu.memory_space<vmem>>, %arg2: memref<2x4x64xf32, #tpu.memory_space<vmem>>, %arg3: memref<1x4x1xf32, #tpu.memory_space<vmem>>, %arg4: memref<64x128xbf16, #tpu.memory_space<vmem>>, %arg5: memref<1x128xf32, #tpu.memory_space<vmem>>, %arg6: memref<2x128xf32, #tpu.memory_space<vmem>>) attributes {dimension_semantics = [#tpu.dimension_semantics<parallel>], iteration_bounds = array<i64: 1>, scalar_prefetch = 0 : i64, scratch_operands = 0 : i64, tpu.core_type = #tpu.core_type<tc>, window_params = [{transform_indices = @transform_0, window_bounds = array<i64: 2, 36, 64>}, {transform_indices = @transform_1, window_bounds = array<i64: 2, 4, 64>}, {pipeline_mode = #tpu.pipeline_mode<synchronous>, transform_indices = @transform_2, window_bounds = array<i64: 1, 4, 1>}, {pipeline_mode = #tpu.pipeline_mode<synchronous>, transform_indices = @transform_3, window_bounds = array<i64: 64, 128>}, {pipeline_mode = #tpu.pipeline_mode<synchronous>, transform_indices = @transform_4, window_bounds = array<i64: 1, 128>}, {transform_indices = @transform_5, window_bounds = array<i64: 2, 128>}]} {
    %c0 = arith.constant 0 : index
    %c0_0 = arith.constant 0 : index
    %c0_1 = arith.constant 0 : index
    %0 = vector.load %arg1[%c0, %c0_0, %c0_1] : memref<2x36x64xf32, #tpu.memory_space<vmem>>, vector<2x36x64xf32>
    %cst = arith.constant dense<0xFF800000> : vector<2x64xf32>
    %1 = vector.multi_reduction <maximumf>, %0, %cst [1] : vector<2x36x64xf32> to vector<2x64xf32>
    %c0_2 = arith.constant 0 : index
    %c0_3 = arith.constant 0 : index
    %c0_4 = arith.constant 0 : index
    %2 = vector.load %arg2[%c0_2, %c0_3, %c0_4] : memref<2x4x64xf32, #tpu.memory_space<vmem>>, vector<2x4x64xf32>
    %c0_5 = arith.constant 0 : index
    %c0_6 = arith.constant 0 : index
    %c0_7 = arith.constant 0 : index
    %3 = vector.load %arg3[%c0_5, %c0_6, %c0_7] : memref<1x4x1xf32, #tpu.memory_space<vmem>>, vector<1x4x1xf32>
    %4 = vector.broadcast %3 : vector<1x4x1xf32> to vector<2x4x64xf32>
    %5 = arith.mulf %2, %4 : vector<2x4x64xf32>
    %cst_8 = arith.constant dense<0.000000e+00> : vector<2x64xf32>
    %6 = vector.multi_reduction <add>, %5, %cst_8 [1] : vector<2x4x64xf32> to vector<2x64xf32>
    %7 = arith.addf %1, %6 : vector<2x64xf32>
    %8 = arith.truncf %7 : vector<2x64xf32> to vector<2x64xbf16>
    %c0_9 = arith.constant 0 : index
    %c0_10 = arith.constant 0 : index
    %9 = vector.load %arg4[%c0_9, %c0_10] : memref<64x128xbf16, #tpu.memory_space<vmem>>, vector<64x128xbf16>
    %cst_11 = arith.constant dense<0.000000e+00> : vector<2x128xf32>
    %10 = tpu.matmul %8, %9, %cst_11 {dimension_numbers = #tpu.dot_dimension_numbers<[1], [0], [0], [1], [0, 0, 1, 1], [], []>} : vector<2x64xbf16>, vector<64x128xbf16>, vector<2x128xf32> -> vector<2x128xf32>
    %c0_12 = arith.constant 0 : index
    %c0_13 = arith.constant 0 : index
    %11 = vector.load %arg5[%c0_12, %c0_13] : memref<1x128xf32, #tpu.memory_space<vmem>>, vector<1x128xf32>
    %12 = vector.broadcast %11 : vector<1x128xf32> to vector<2x128xf32>
    %13 = arith.addf %10, %12 : vector<2x128xf32>
    %c0_14 = arith.constant 0 : index
    %c0_15 = arith.constant 0 : index
    %14 = vector.load %arg6[%c0_14, %c0_15] : memref<2x128xf32, #tpu.memory_space<vmem>>, vector<2x128xf32>
    tpu.vector_store %arg6[%c0_14, %c0_15], %13 {strides = array<i32>} : memref<2x128xf32, #tpu.memory_space<vmem>>, vector<2x128xf32>,
    return
  }
  func.func @transform_0(%arg0: i32) -> (i32, i32, i32) {
    %c0_i32 = arith.constant 0 : i32
    %c0_i32_0 = arith.constant 0 : i32
    %c0_i32_1 = arith.constant 0 : i32
    return %arg0, %c0_i32, %c0_i32_0 : i32, i32, i32
  }
  func.func @transform_1(%arg0: i32) -> (i32, i32, i32) {
    %c0_i32 = arith.constant 0 : i32
    %c0_i32_0 = arith.constant 0 : i32
    %c0_i32_1 = arith.constant 0 : i32
    return %arg0, %c0_i32, %c0_i32_0 : i32, i32, i32
  }
  func.func @transform_2(%arg0: i32) -> (i32, i32, i32) {
    %c0_i32 = arith.constant 0 : i32
    %c0_i32_0 = arith.constant 0 : i32
    %c0_i32_1 = arith.constant 0 : i32
    %c0_i32_2 = arith.constant 0 : i32
    return %c0_i32, %c0_i32_0, %c0_i32_1 : i32, i32, i32
  }
  func.func @transform_3(%arg0: i32) -> (i32, i32) {
    %c0_i32 = arith.constant 0 : i32
    %c0_i32_0 = arith.constant 0 : i32
    %c0_i32_1 = arith.constant 0 : i32
    return %c0_i32, %c0_i32_0 : i32, i32
  }
  func.func @transform_4(%arg0: i32) -> (i32, i32) {
    %c0_i32 = arith.constant 0 : i32
    %c0_i32_0 = arith.constant 0 : i32
    %c0_i32_1 = arith.constant 0 : i32
    return %c0_i32, %c0_i32_0 : i32, i32
  }
  func.func @transform_5(%arg0: i32) -> (i32, i32) {
    %c0_i32 = arith.constant 0 : i32
    %c0_i32_0 = arith.constant 0 : i32
    return %arg0, %c0_i32 : i32, i32
  }
}

</mosaic_0001>

<bundles_post_ra>
// kernel: tpu_custom_call.1
= control target key start
LH: loop header
LB: loop body
LE: loop exit
PB: predicated region body
PF: predicated region fallthrough
CT: control target
= control target key end

     0   :  { %v219_v1 = vmov 0   ;;  %s321_s0 = inlined_call_operand.vmem [shape: f32[2,36,64], index: 0, kind: input, shape index: {}]   ;;  %s322_s1 = inlined_call_operand.vmem [shape: f32[2,4,64], index: 1, kind: input, shape index: {}]   ;;  %s323_s2 = inlined_call_operand.vmem [shape: f32[1,4,1], index: 2, kind: input, shape index: {}]   ;;  %s324_s3 = inlined_call_operand.vmem [shape: bf16[64,128], index: 3, kind: input, shape index: {}]   ;;  %s325_s4 = inlined_call_operand.vmem [shape: f32[1,128], index: 4, kind: input, shape index: {}]   ;;  %s326_s5 = inlined_call_operand.hbm [shape: f32[2,128], index: 5, kind: output, shape index: {}]  }
   0x1   :  { %v66_v0 = vld [vmem:[%s323_s2] sm:$0xf]  ;;  %191 = vset.pattern.permute.xlu0 %v219_v1 }
   0x2   :  { %10 = vsyncpa [#allocation3], 0  ;;  %69 = vperm.xlu0 %191, %v66_v0   ;;  %v22_v2 = vld [vmem:[%s321_s0] sm:$0xff]  ;;  %v24_v3 = vld [vmem:[%s321_s0 + $0x10] sm:$0xff]  ;;  %vm32_vm0 = vcmask 523264   ;;  %vm39_vm1 = vcmask 519168  }
   0x3   :  { %v27_v4 = vld [vmem:[%s321_s0 + $0x28] sm:$0xff]  ;;  %v29_v5 = vld [vmem:[%s321_s0 + $0x38] sm:$0xff]  ;;  %v33_v6 = vsel %vm32_vm0, %v22_v2, -inf  ;;  %v35_v7 = vsel %vm32_vm0, %v24_v3, -inf  ;;  %v26_v11 = vld [vmem:[%s321_s0 + $0x20] sm:$0xf] }
   0x4   :  { %v188_v8 = vld [vmem:[%s324_s3 + $0x18] sm:$0xff]  ;;  %v23_v9 = vld [vmem:[%s321_s0 + $0x8] sm:$0xff]  ;;  %v49_v12 = vsel %vm32_vm0, %v27_v4, -inf  ;;  %v51_v13 = vsel %vm32_vm0, %v29_v5, -inf  ;;  %v28_v14 = vld [vmem:[%s321_s0 + $0x30] sm:$0xff]  ;;  %v36_v18 = vmax.f32 %v33_v6, %v35_v7  ;;  %v40_v22 = vsel %vm39_vm1, %v26_v11, -inf }
   0x5   :  { %v25_v10 = vld [vmem:[%s321_s0 + $0x18] sm:$0xff]  ;;  %v30_v15 = vld [vmem:[%s321_s0 + $0x40] sm:$0xff]  ;;  %v31_v16 = vld [vmem:[%s321_s0 + $0x48] sm:$0xf]  ;;  %142 = vmatpush.bf16.msra.mxu0 %v188_v8  ;;  %v34_v17 = vsel %vm32_vm0, %v23_v9, -inf  ;;  %v52_v20 = vmax.f32 %v49_v12, %v51_v13  ;;  %v50_v23 = vsel %vm32_vm0, %v28_v14, -inf }
   0x6   :  { %v37_v19 = vsel %vm32_vm0, %v25_v10, -inf  ;;  %v187_v21 = vld [vmem:[%s324_s3 + $0x10] sm:$0xff]  ;;  %v53_v24 = vsel %vm32_vm0, %v30_v15, -inf  ;;  %v55_v25 = vsel %vm39_vm1, %v31_v16, -inf  ;;  %v41_v27 = vmax.f32 %v36_v18, %v40_v22  ;;  %v186_v30 = vld [vmem:[%s324_s3 + $0x8] sm:$0xff]  ;;  %v185_v31 = vld [vmem:[%s324_s3] sm:$0xff] }
   0x7   :  { %v38_v26 = vmax.f32 %v34_v17, %v37_v19  ;;  %v54_v28 = vmax.f32 %v50_v23, %v53_v24  ;;  %v56_v29 = vmax.f32 %v52_v20, %v55_v25  ;;  %v64_v38 = vld [vmem:[%s322_s1] sm:$0xf]  ;;  %v65_v39 = vld [vmem:[%s322_s1 + $0x4] sm:$0xf]  ;;  %vm108_vm2 = vcmask 1041409   ;;  %s220_s25 = smov [#allocation2]  }
   0x8   :  { %v192_v9 = vld [vmem:[%s325_s4] ss:$0 sm:$0xff]  ;;  %s157_s26 = sshll.u32 %s220_s25, 4  ;;  %s159_s28 = sshll.u32 %s326_s5, 4  ;;  %s158_s26 = int_to_ptr.vmem [resolvable:$true] %s157_s26  ;;  %s160_s28 = int_to_ptr.hbm [resolvable:$true] %s159_s28 }
   0x9   :  { %143 = vmatpush.bf16.msra.mxu0 %v187_v21  ;;  %v42_v32 = vmax.f32 %v41_v27, %v38_v26  ;;  %v57_v33 = vmax.f32 %v56_v29, %v54_v28 }
   0xb   :  { %v43_v34 = vrot.slane %v42_v32, 4  ;;  %v58_v35 = vrot.slane %v57_v33, 4 }
   0xd   :  { %144 = vmatpush.bf16.msra.mxu0 %v186_v30  ;;  %v44_v36 = vmax.f32 %v42_v32, %v43_v34  ;;  %v59_v37 = vmax.f32 %v57_v33, %v58_v35 }
   0xf   :  { %v45_v41 = vrot.slane %v44_v36, 2  ;;  %v60_v42 = vrot.slane %v59_v37, 2 }
  0x11   :  { %145 = vmatpush.bf16.msra.mxu0 %v185_v31  ;;  %v46_v47 = vmax.f32 %v44_v36, %v45_v41  ;;  %v61_v48 = vmax.f32 %v59_v37, %v60_v42 }
  0x13   :  { %v47_v53 = vrot.slane %v46_v47, 1  ;;  %v62_v54 = vrot.slane %v61_v48, 1 }
  0x15   :  { %v48_v59 = vmax.f32 %v46_v47, %v47_v53  ;;  %v63_v60 = vmax.f32 %v61_v48, %v62_v54 }
  0x74   :  { %v70_v40 = vpop.permute.xlu0 %69 }
  0x75   :  { %v72_v43 = vmul.f32 %v70_v40, %v64_v38  ;;  %v73_v44 = vmul.f32 %v70_v40, %v65_v39 }
  0x77   :  { %v74_v45 = vsel %vm39_vm1, %v72_v43, 0.0  ;;  %v81_v46 = vsel %vm39_vm1, %v73_v44, 0.0 }
  0x78   :  { %v75_v49 = vrot.slane %v74_v45, 4  ;;  %v82_v50 = vrot.slane %v81_v46, 4 }
  0x7a   :  { %v76_v51 = vadd.f32 %v75_v49, %v74_v45  ;;  %v83_v52 = vadd.f32 %v82_v50, %v81_v46 }
  0x7c   :  { %v77_v55 = vrot.slane %v76_v51, 2  ;;  %v84_v56 = vrot.slane %v83_v52, 2 }
  0x7e   :  { %v78_v57 = vadd.f32 %v77_v55, %v76_v51  ;;  %v85_v58 = vadd.f32 %v84_v56, %v83_v52 }
  0x80   :  { %v79_v61 = vrot.slane %v78_v57, 1  ;;  %v86_v62 = vrot.slane %v85_v58, 1 }
  0x82   :  { %v80_v63 = vadd.f32 %v79_v61, %v78_v57  ;;  %v87_v0 = vadd.f32 %v86_v62, %v85_v58 }
  0x84   :  { %v88_v1 = vadd.f32 %v80_v63, %v48_v59  ;;  %v89_v2 = vadd.f32 %v87_v0, %v63_v60 }
  0x86   :  { %v90_v3 = vpack.c.bf16 %v88_v1, %v88_v1  ;;  %v91_v4 = vpack.c.bf16 %v89_v2, %v89_v2 }
  0x88   :  { %v106_v5 = vunpack.c.l.b16 %v90_v3  ;;  %v107_v6 = vunpack.c.l.b16 %v91_v4 }
  0x8a   :  { %v109_v7 = vsel %vm108_vm2, %v107_v6, %v106_v5 }
  0x8b   :  { %v110_v8 = vpack.c.b16 %v109_v7, %v109_v7 }
  0x8d   :  { %184 = vmatmul.msk.bf16.vlgmr.msra.gmra.mxu0 %vm32_vm0, %v110_v8 }
 0x10a   :  { %v147_v10 = vpop.f32.mrf.mxu0 }
 0x10b   :  { %v148_v11 = vadd.f32 %v192_v9, %v147_v10 }
 0x10d   :  { %151 = vst [vmem:[#allocation2] sm:$0x3] %v148_v11 }
 0x10e   :  { %162 = dma.vmem_to_hbm [thread:$0]  %s158_s26, 32, %s160_s28, [#allocation3]  }
 0x112   :  { %v149_v12 = vpop.f32.mrf.mxu0 }
 0x113   :  { %217 = dma.done.wait [#allocation3], 32  }
 0x114   :  { %218 = vsyncadd [#allocation3], 4294967264 }
 0x115   :  { %167 = vsyncpa [#allocation3], 1 }

</bundles_post_ra>
